<compile_context>
chip_gen: v7x
topology: tpu7x:2x2x1
jax: 0.10.0
libtpu: 0.0.40
codegen_flags: <defaults>
</compile_context>

<pallas_src>
import functools
import math

import numpy as np
import jax
import jax.numpy as jnp
from jax.experimental import pallas as pl
from jax.experimental.pallas import tpu as pltpu


# ---------------------------------------------------------------------------
# Glue: mel filterbank construction (numpy, static) and parameter init.
# ---------------------------------------------------------------------------
def create_fb_matrix(n_freqs, f_min, f_max, n_mels, sample_rate):
    """Numpy port of the torchaudio-style triangular mel filterbank (norm=None)."""
    all_freqs = np.linspace(0.0, sample_rate // 2, n_freqs)
    m_min = 2595.0 * math.log10(1.0 + f_min / 700.0)
    m_max = 2595.0 * math.log10(1.0 + f_max / 700.0)
    m_pts = np.linspace(m_min, m_max, n_mels + 2)
    f_pts = 700.0 * (10.0 ** (m_pts / 2595.0) - 1.0)
    f_diff = f_pts[1:] - f_pts[:-1]
    slopes = f_pts[None, :] - all_freqs[:, None]
    down_slopes = -1.0 * slopes[:, :-2] / f_diff[:-1]
    up_slopes = slopes[:, 2:] / f_diff[1:]
    fb = np.maximum(0.0, np.minimum(down_slopes, up_slopes))
    return fb.astype(np.float32)


def init_params(key, *, n_freq, n_ch, fs, n_mels, n_filter):
    """Build the zero-padded weight matrix W^T (N, K) and bias (N, 1).

    Per-mel Conv1d weights (n_filter, n_ch, size_m) and biases (n_filter,)
    are sampled like PyTorch's default Conv1d init (uniform +-1/sqrt(fan_in))
    and scattered into W^T at the frequency bins selected by the mel mask.
    Column order k = c * n_freq + f matches x[b].reshape(c*n_freq, n_time);
    row order n = filter * n_mels + mel matches the PyTorch output layout.
    """
    fb = create_fb_matrix(n_freq, 0.0, fs // 2, n_mels, fs)
    mask = fb > 0.0                                     # (n_freq, n_mels)

    w_big = np.zeros((n_filter, n_mels, n_ch, n_freq), np.float32)
    b_big = np.zeros((n_filter, n_mels), np.float32)

    for m in range(n_mels):
        idx = np.where(mask[:, m])[0]
        size = int(idx.size)
        assert size > 0, f"mel filter {m} selects no frequency bins"
        key, k_w, k_b = jax.random.split(key, 3)
        bound = 1.0 / math.sqrt(n_ch * size)
        w_m = np.asarray(
            jax.random.uniform(k_w, (n_filter, n_ch, size), jnp.float32,
                               minval=-bound, maxval=bound))
        b_m = np.asarray(
            jax.random.uniform(k_b, (n_filter,), jnp.float32,
                               minval=-bound, maxval=bound))
        for k, f in enumerate(idx):
            w_big[:, m, :, f] = w_m[:, :, k]
        b_big[:, m] = b_m

    WT = w_big.reshape(n_filter * n_mels, n_ch * n_freq)    # (N, K) float32
    bias = b_big.reshape(n_filter * n_mels, 1)               # (N, 1) float32
    return jnp.asarray(WT), jnp.asarray(bias)


# ---------------------------------------------------------------------------
# Pallas kernel: fused (W^T @ x_tile) + bias + ReLU.
# ---------------------------------------------------------------------------
def _mel_matmul_kernel(wt_ref, b_ref, x_ref, o_ref):
    # wt_ref: (N, K) bf16 (resident), x_ref: (K, T_TILE) f32, o_ref: (N, T_TILE).
    x_bf16 = x_ref[...].astype(jnp.bfloat16)           # VPU cast, no extra HBM pass
    acc = jnp.dot(wt_ref[...], x_bf16,
                  preferred_element_type=jnp.float32)   # bf16 MXU, f32 accumulate
    o_ref[...] = jnp.maximum(acc + b_ref[...], 0.0).astype(o_ref.dtype)


def _round_up(a, b):
    return ((a + b - 1) // b) * b


def mel_filter_forward(x, WT, bias, *, n_filter, n_mels, t_tile_max=2048,
                       out_dtype=jnp.float32):
    """x: (b, c, n_freq, n_time) f32 -> (b, n_filter, n_mels, n_time) out_dtype."""
    b, c, n_freq, n_time = x.shape
    K = c * n_freq
    N = WT.shape[0]
    assert N == n_filter * n_mels

    # Pure view: native layout already gives (b, K, T) with k = c*n_freq + f.
    x3 = x.reshape(b, K, n_time)

    # Time is the lane dim; tile it in multiples of 128, as large as allowed.
    # No wrapper pad / post-slice: Pallas clamps the ragged last tile's DMA
    # and masks its stores (time is not the contraction dim, so stale lanes
    # in the edge x tile never reach valid output columns).
    t_tile = min(t_tile_max, _round_up(n_time, 128))
    grid = (b, pl.cdiv(n_time, t_tile))

    cost = pl.CostEstimate(
        flops=2 * b * n_time * K * N,
        transcendentals=0,
        bytes_accessed=(b * K * n_time * x.dtype.itemsize    # x
                        + N * K * WT.dtype.itemsize          # W^T (bf16)
                        + N * 4                               # bias
                        + b * N * n_time * jnp.dtype(out_dtype).itemsize))  # out

    out = pl.pallas_call(
        _mel_matmul_kernel,
        out_shape=jax.ShapeDtypeStruct((b, N, n_time), out_dtype),
        grid_spec=pltpu.PrefetchScalarGridSpec(
            num_scalar_prefetch=0,
            grid=grid,
            in_specs=[
                # Grid-invariant operands: single buffer is enough.
                pl.BlockSpec((N, K), lambda bi, ti: (0, 0),
                             pipeline_mode=pl.Buffered(1)),           # W^T resident
                pl.BlockSpec((N, 1), lambda bi, ti: (0, 0),
                             pipeline_mode=pl.Buffered(1)),           # bias resident
                pl.BlockSpec((None, K, t_tile), lambda bi, ti: (bi, 0, ti)),  # x tile
            ],
            out_specs=pl.BlockSpec((None, N, t_tile), lambda bi, ti: (bi, 0, ti)),
        ),
        compiler_params=pltpu.CompilerParams(
            dimension_semantics=("parallel", "parallel")),
        cost_estimate=cost,
    )(WT, bias, x3)

    return out.reshape(b, n_filter, n_mels, n_time)          # pure view


# ---------------------------------------------------------------------------
if __name__ == "__main__":
    # Small, module-consistent shapes: n_freq = n_fft//2 + 1 (n_fft=128).
    # Two time lengths: 200 (ragged -> masked edge tile) and 256 (lane-aligned).
    b, n_ch, n_freq = 2, 4, 65
    fs, n_mels, n_filter = 16000, 8, 16

    key = jax.random.PRNGKey(0)
    k_x, k_p = jax.random.split(key)

    WT_f32, bias = init_params(k_p, n_freq=n_freq, n_ch=n_ch, fs=fs,
                               n_mels=n_mels, n_filter=n_filter)
    WT = WT_f32.astype(jnp.bfloat16)   # weights stored bf16; f32 MXU accumulate

    fwd = jax.jit(functools.partial(mel_filter_forward,
                                    n_filter=n_filter, n_mels=n_mels))

    K = n_ch * n_freq
    for n_time in (200, 256):
        kx = jax.random.fold_in(k_x, n_time)
        x = jax.random.normal(kx, (b, n_ch, n_freq, n_time), jnp.float32)

        out = jax.block_until_ready(fwd(x, WT, bias))
        assert out.shape == (b, n_filter, n_mels, n_time), out.shape

        # Plain-JAX f32 reference of the same math (matmul + bias + ReLU).
        # Tolerance absorbs the bf16-weight/input delta (f32 accumulation).
        x3 = x.reshape(b, K, n_time)
        ref = jnp.maximum(
            jnp.einsum('nk,bkt->bnt', WT_f32, x3,
                       precision=jax.lax.Precision.HIGHEST) + bias[None], 0.0)
        ref = ref.reshape(b, n_filter, n_mels, n_time)
        np.testing.assert_allclose(np.asarray(out), np.asarray(ref),
                                   rtol=2e-2, atol=2e-2)

    print("KERNEL_OK")
</pallas_src>

<mosaic_0001>
module attributes {stable_mosaic.version = 11 : i64} {
  func.func @_mel_matmul_kernel(%arg0: i32, %arg1: i32, %arg2: memref<128x260xbf16, #tpu.memory_space<vmem>>, %arg3: memref<128x1xf32, #tpu.memory_space<vmem>>, %arg4: memref<1x260x256xf32, #tpu.memory_space<vmem>>, %arg5: memref<1x128x256xf32, #tpu.memory_space<vmem>>) attributes {dimension_semantics = [#tpu.dimension_semantics<parallel>, #tpu.dimension_semantics<parallel>], iteration_bounds = array<i64: 2, 1>, scalar_prefetch = 0 : i64, scratch_operands = 0 : i64, tpu.core_type = #tpu.core_type<tc>, window_params = [{pipeline_mode = #tpu.pipeline_mode<synchronous>, transform_indices = @transform_0, window_bounds = array<i64: 128, 260>}, {pipeline_mode = #tpu.pipeline_mode<synchronous>, transform_indices = @transform_1, window_bounds = array<i64: 128, 1>}, {transform_indices = @transform_2, window_bounds = array<i64: 1, 260, 256>}, {transform_indices = @transform_3, window_bounds = array<i64: 1, 128, 256>}]} {
    %c0 = arith.constant 0 : index
    %c0_0 = arith.constant 0 : index
    %c0_1 = arith.constant 0 : index
    %0 = vector.load %arg4[%c0, %c0_0, %c0_1] : memref<1x260x256xf32, #tpu.memory_space<vmem>>, vector<1x260x256xf32>
    %1 = vector.shape_cast %0 : vector<1x260x256xf32> to vector<260x256xf32>
    %2 = arith.truncf %1 : vector<260x256xf32> to vector<260x256xbf16>
    %c0_2 = arith.constant 0 : index
    %c0_3 = arith.constant 0 : index
    %3 = vector.load %arg2[%c0_2, %c0_3] : memref<128x260xbf16, #tpu.memory_space<vmem>>, vector<128x260xbf16>
    %cst = arith.constant dense<0.000000e+00> : vector<128x256xf32>
    %4 = tpu.matmul %3, %2, %cst {dimension_numbers = #tpu.dot_dimension_numbers<[1], [0], [0], [1], [0, 0, 1, 1], [], []>} : vector<128x260xbf16>, vector<260x256xbf16>, vector<128x256xf32> -> vector<128x256xf32>
    %c0_4 = arith.constant 0 : index
    %c0_5 = arith.constant 0 : index
    %5 = vector.load %arg3[%c0_4, %c0_5] : memref<128x1xf32, #tpu.memory_space<vmem>>, vector<128x1xf32>
    %6 = vector.broadcast %5 : vector<128x1xf32> to vector<128x256xf32>
    %7 = arith.addf %4, %6 : vector<128x256xf32>
    %cst_6 = arith.constant 0.000000e+00 : f32
    %8 = vector.broadcast %cst_6 : f32 to vector<128x256xf32>
    %9 = arith.maximumf %7, %8 : vector<128x256xf32>
    %c0_7 = arith.constant 0 : index
    %c0_8 = arith.constant 0 : index
    %c0_9 = arith.constant 0 : index
    %10 = vector.load %arg5[%c0_7, %c0_8, %c0_9] : memref<1x128x256xf32, #tpu.memory_space<vmem>>, vector<1x128x256xf32>
    %11 = vector.shape_cast %10 : vector<1x128x256xf32> to vector<128x256xf32>
    %12 = vector.shape_cast %9 : vector<128x256xf32> to vector<1x128x256xf32>
    tpu.vector_store %arg5[%c0_7, %c0_8, %c0_9], %12 {strides = array<i32>} : memref<1x128x256xf32, #tpu.memory_space<vmem>>, vector<1x128x256xf32>,
    return
  }
  func.func @transform_0(%arg0: i32, %arg1: i32) -> (i32, i32) {
    %c0_i32 = arith.constant 0 : i32
    %c0_i32_0 = arith.constant 0 : i32
    %c0_i32_1 = arith.constant 0 : i32
    return %c0_i32, %c0_i32_0 : i32, i32
  }
  func.func @transform_1(%arg0: i32, %arg1: i32) -> (i32, i32) {
    %c0_i32 = arith.constant 0 : i32
    %c0_i32_0 = arith.constant 0 : i32
    %c0_i32_1 = arith.constant 0 : i32
    return %c0_i32, %c0_i32_0 : i32, i32
  }
  func.func @transform_2(%arg0: i32, %arg1: i32) -> (i32, i32, i32) {
    %c0_i32 = arith.constant 0 : i32
    %c0_i32_0 = arith.constant 0 : i32
    return %arg0, %c0_i32, %arg1 : i32, i32, i32
  }
  func.func @transform_3(%arg0: i32, %arg1: i32) -> (i32, i32, i32) {
    %c0_i32 = arith.constant 0 : i32
    %c0_i32_0 = arith.constant 0 : i32
    return %arg0, %c0_i32, %arg1 : i32, i32, i32
  }
}

</mosaic_0001>

<bundles_post_ra>
// kernel: mel_filter_forward.1
= control target key start
LH: loop header
LB: loop body
LE: loop exit
PB: predicated region body
PF: predicated region fallthrough
CT: control target
= control target key end

     0   :  { %8 = vsyncpa [#allocation3], 0  ;;  %s1705_s0 = inlined_call_operand.vmem [shape: bf16[128,260], index: 0, kind: input, shape index: {}]   ;;  %s1706_s1 = inlined_call_operand.vmem [shape: f32[128,1], index: 1, kind: input, shape index: {}]   ;;  %s1707_s2 = inlined_call_operand.vmem [shape: f32[2,260,200], index: 2, kind: input, shape index: {}]   ;;  %s1708_s3 = inlined_call_operand.hbm [shape: f32[2,128,200], index: 3, kind: output, shape index: {}]  }
   0x1   :  { %10 = vsyncpa [#allocation3 + $0x1], 0  ;;  %s1273_s12 = smov 0   ;;  %s1275_s13 = smov 0  }
   0x2   :  { %s1277_s14 = smov 0   ;;  %s1279_s15 = smov 0  }
   0x3   :  { %s1281_s16 = smov 0   ;;  %s1283_s17 = smov 0  }
   0x4 LB: > { %s966_s18 = sadd.s32 4294967295, %s1247_s17   ;;  %s967_s19 = sadd.s32 4294967294, %s1247_s17   ;;  %s1247_s17 = sphi %s1283_s17, %s16_s17   ;;  %s1243_s16 = sphi %s1281_s16, %s1715_s16   ;;  %s1239_s15 = sphi %s1279_s15, %s1714_s15   ;;  %s1235_s14 = sphi %s1277_s14, %s1713_s14   ;;  %s1231_s13 = sphi %s1275_s13, %s1712_s13   ;;  %s1227_s12 = sphi %s1273_s12, %s1711_s12  }
   0x5   : > { %s28_s20 = sadd.s32 1, %s1243_s16  ;;  %s107_s21 = sadd.s32 1, %s1235_s14 }
   0x6   : > { %p30_p0 = scmp.ge.s32.totalorder %s28_s20, 2  ;;  %p117_p1 = scmp.ne.s32.totalorder %s1235_s14, %s1231_s13 }
   0x7   : > { %p118_p2 = scmp.eq.s32.totalorder %s966_s18, 1  ;;  %p123_p3 = scmp.ne.s32.totalorder %s1231_s13, %s1227_s12 }
   0x8   : > { %s1717_s20 = smov (%p30_p0, %s28_s20), 0  ;;  %p124_p5 = scmp.eq.s32.totalorder %s967_s19, 1 }
   0x9   : > { %p1313_p4 = por %p118_p2, %p117_p1  ;;  %s102_s23 = ssub.s32 %s1243_s16, %s1717_s20 }
   0xa   : > { %p970_p6 = scmp.ge.s32.totalorder %s1247_s17, 1  ;;  %p105_p7 = scmp.eq.s32.totalorder %s102_s23, 0 }
   0xb   : > { %p1320_p8 = por %p124_p5, %p123_p3  ;;  %p161_p9 = scmp.lt.s32.totalorder %s1247_s17, 3 }
   0xc   : > { %s1326_s25 = scalar_select %p105_p7, %s1235_s14, %s107_s21  }
   0xd   : > { %p162_p10 = pnand %p970_p6, %p161_p9 }
   0xe   : > { %p190_p11 = scmp.lt.s32.totalorder (!%p162_p10), %s1239_s15, 1  ;;  %v1249_v0 = vmov (!%p162_p10), 0   ;;  %v1139_v1 = vld [vmem:[%s1705_s0 + $0x4] ss:$12 sps:$4 sm:$0xff] (!%p162_p10)   ;;  %vm574_vm0 = vcmask (!%p162_p10), 1041408   ;;  %vm549_vm1 = vcmask (!%p162_p10), 31744  }
   0xf   : > { %165 = sbr.rel (%p162_p10) target bundleno = 386 (0x182), region = 32  ;;  %726 = vmatprep.mubr.bf16.mxu0 (!%p162_p10), %v1249_v0  ;;  %1135 = vset.pattern.permute.xlu0 (!%p162_p10), %v1249_v0  ;;  %v1140_v52 = vld [vmem:[%s1705_s0 + $0x8] ss:$12 sps:$4 sm:$0xff] (!%p162_p10)   ;;  %v1143_v63 = vld [vmem:[%s1705_s0 + $0x20] ss:$12 sps:$4 sm:$0xff] (!%p162_p10)   ;;  %s1011_s30 = sshll.u32 (!%p162_p10), %s1239_s15, 12 }
  0x10   : > { %1136 = vset.pattern.permute.xlu1 (!%p162_p10), %v1249_v0  ;;  %613 = vmatprep.mubr.bf16.mxu1 (!%p162_p10), %v1139_v1  ;;  %s1650_s8 = scalar_lea.hbm (!%p162_p10), %s1708_s3, %s1011_s30  ;;  %s1250_s10 = smov (!%p162_p10), [#allocation2]  }
  0x11   : > { %s1173_s11 = sshll.u32 (!%p162_p10), %s1250_s10, 4  ;;  %s1174_s11 = int_to_ptr.vmem [resolvable:$false] %s1173_s11 }
  0x12   : > { %s1175_s18 = scalar_lea.vmem (!%p162_p10), %s1174_s11, 8192 }
  0x16   : > { %s191_s28 = scalar_select %p190_p11, %s1239_s15, 1 }
  0x18   : > { %s1076_s29 = smul.u32 528, %s191_s28 }
  0x1a   : > { %s1339_s5 = scalar_lea.vmem %s1707_s2, %s1076_s29 }
  0x1b   : > { %v202_v2 = vld [vmem:[%s1339_s5 + $0x8] sm:$0xff]  ;;  %v204_v3 = vld [vmem:[%s1339_s5 + $0x18] sm:$0xff]  ;;  %v201_v4 = vld [vmem:[%s1339_s5] sm:$0xff] }
  0x1c   : > { %v268_v5 = vpack.c.bf16 %v204_v3, %v202_v2  ;;  %v203_v6 = vld [vmem:[%s1339_s5 + $0x10] sm:$0xff]  ;;  %v206_v7 = vld [vmem:[%s1339_s5 + $0x28] sm:$0xff]  ;;  %v208_v8 = vld [vmem:[%s1339_s5 + $0x38] sm:$0xff] }
  0x1d   : > { %v267_v9 = vpack.c.bf16 %v203_v6, %v201_v4  ;;  %v270_v10 = vpack.c.bf16 %v208_v8, %v206_v7  ;;  %v205_v11 = vld [vmem:[%s1339_s5 + $0x20] sm:$0xff]  ;;  %v207_v12 = vld [vmem:[%s1339_s5 + $0x30] sm:$0xff]  ;;  %v210_v13 = vld [vmem:[%s1339_s5 + $0x48] sm:$0xff] }
  0x1e   : > { %581 = vmatprep.subr.bf16.mxu1 %v268_v5  ;;  %v212_v14 = vld [vmem:[%s1339_s5 + $0x58] sm:$0xff]  ;;  %v269_v15 = vpack.c.bf16 %v207_v12, %v205_v11  ;;  %v209_v17 = vld [vmem:[%s1339_s5 + $0x40] sm:$0xff]  ;;  %v211_v18 = vld [vmem:[%s1339_s5 + $0x50] sm:$0xff] }
  0x1f   : > { %582 = vmatpush1.bf16.msra.mxu1 %v267_v9  ;;  %v272_v16 = vpack.c.bf16 %v212_v14, %v210_v13  ;;  %v214_v19 = vld [vmem:[%s1339_s5 + $0x68] sm:$0xff]  ;;  %v216_v20 = vld [vmem:[%s1339_s5 + $0x78] sm:$0xff]  ;;  %v271_v21 = vpack.c.bf16 %v211_v18, %v209_v17  ;;  %v213_v23 = vld [vmem:[%s1339_s5 + $0x60] sm:$0xff] }
  0x20   : > { %583 = vmatprep.subr.bf16.mxu1 %v270_v10  ;;  %v274_v22 = vpack.c.bf16 %v216_v20, %v214_v19  ;;  %v215_v24 = vld [vmem:[%s1339_s5 + $0x70] sm:$0xff]  ;;  %v218_v25 = vld [vmem:[%s1339_s5 + $0x88] sm:$0xff]  ;;  %v220_v26 = vld [vmem:[%s1339_s5 + $0x98] sm:$0xff] }
  0x21   : > { %v273_v27 = vpack.c.bf16 %v215_v24, %v213_v23  ;;  %v276_v28 = vpack.c.bf16 %v220_v26, %v218_v25  ;;  %v217_v29 = vld [vmem:[%s1339_s5 + $0x80] sm:$0xff]  ;;  %v219_v30 = vld [vmem:[%s1339_s5 + $0x90] sm:$0xff]  ;;  %v222_v31 = vld [vmem:[%s1339_s5 + $0xa8] sm:$0xff] }
  0x22   : > { %v224_v32 = vld [vmem:[%s1339_s5 + $0xb8] sm:$0xff]  ;;  %v275_v33 = vpack.c.bf16 %v219_v30, %v217_v29  ;;  %v221_v35 = vld [vmem:[%s1339_s5 + $0xa0] sm:$0xff]  ;;  %v223_v36 = vld [vmem:[%s1339_s5 + $0xb0] sm:$0xff] }
  0x23   : > { %584 = vmatpush1.bf16.msra.mxu1 %v269_v15  ;;  %v278_v34 = vpack.c.bf16 %v224_v32, %v222_v31  ;;  %v226_v37 = vld [vmem:[%s1339_s5 + $0xc8] sm:$0xff]  ;;  %v228_v38 = vld [vmem:[%s1339_s5 + $0xd8] sm:$0xff]  ;;  %v277_v39 = vpack.c.bf16 %v223_v36, %v221_v35  ;;  %v225_v40 = vld [vmem:[%s1339_s5 + $0xc0] sm:$0xff] }
  0x24   : > { %585 = vmatprep.subr.bf16.mxu1 %v272_v16  ;;  %v266_v41 = vld [vmem:[%s1339_s5 + $0x208] sm:$0xf]  ;;  %v280_v42 = vpack.c.bf16 %v228_v38, %v226_v37  ;;  %v227_v43 = vld [vmem:[%s1339_s5 + $0xd0] sm:$0xff]  ;;  %v265_v46 = vld [vmem:[%s1339_s5 + $0x200] sm:$0xf] }
  0x25   : > { %v230_v44 = vld [vmem:[%s1339_s5 + $0xe8] sm:$0xff]  ;;  %v300_v45 = vpack.c.bf16 %v266_v41, %v266_v41  ;;  %v232_v47 = vld [vmem:[%s1339_s5 + $0xf8] sm:$0xff]  ;;  %v299_v48 = vpack.c.bf16 %v265_v46, %v265_v46  ;;  %v279_v49 = vpack.c.bf16 %v227_v43, %v225_v40  ;;  %v229_v50 = vld [vmem:[%s1339_s5 + $0xe0] sm:$0xff] }
  0x26   : > { %v282_v53 = vpack.c.bf16 %v232_v47, %v230_v44  ;;  %v231_v54 = vld [vmem:[%s1339_s5 + $0xf0] sm:$0xff]  ;;  %v234_v55 = vld [vmem:[%s1339_s5 + $0x108] sm:$0xff]  ;;  %v236_v56 = vld [vmem:[%s1339_s5 + $0x118] sm:$0xff] }
  0x27   : > { %586 = vmatpush1.bf16.msra.mxu1 %v271_v21  ;;  %997 = vmatprep.subr.msk.bf16.mxu0 %vm574_vm0, %v300_v45  ;;  %v576_v51 = vsel %vm574_vm0, %v299_v48, 0  ;;  %v233_v57 = vld [vmem:[%s1339_s5 + $0x100] sm:$0xff]  ;;  %v281_v58 = vpack.c.bf16 %v231_v54, %v229_v50  ;;  %v235_v59 = vld [vmem:[%s1339_s5 + $0x110] sm:$0xff]  ;;  %v284_v60 = vpack.c.bf16 %v236_v56, %v234_v55  ;;  %v238_v61 = vld [vmem:[%s1339_s5 + $0x128] sm:$0xff] }
  0x28   : > { %587 = vmatprep.subr.bf16.mxu1 %v274_v22  ;;  %695 = vmatpush1.bf16.msra.mxu0 %v576_v51  ;;  %v240_v62 = vld [vmem:[%s1339_s5 + $0x138] sm:$0xff]  ;;  %v283_v1 = vpack.c.bf16 %v235_v59, %v233_v57  ;;  %v237_v2 = vld [vmem:[%s1339_s5 + $0x120] sm:$0xff]  ;;  %v239_v4 = vld [vmem:[%s1339_s5 + $0x130] sm:$0xff] }
  0x29   : > { %v286_v3 = vpack.c.bf16 %v240_v62, %v238_v61  ;;  %v242_v5 = vld [vmem:[%s1339_s5 + $0x148] sm:$0xff]  ;;  %v244_v6 = vld [vmem:[%s1339_s5 + $0x158] sm:$0xff]  ;;  %v333_v7 = vld [vmem:[%s1706_s1] sm:$0xff]  ;;  %v285_v9 = vpack.c.bf16 %v239_v4, %v237_v2 }
  0x2a   : > { %v335_v8 = vld [vmem:[%s1706_s1 + $0x10] sm:$0xff]  ;;  %351 = vperm.xlu0 %1135, %v333_v7   ;;  %v334_v10 = vld [vmem:[%s1706_s1 + $0x8] sm:$0xff]  ;;  %v336_v11 = vld [vmem:[%s1706_s1 + $0x18] sm:$0xff]  ;;  %v288_v12 = vpack.c.bf16 %v244_v6, %v242_v5 }
  0x2b   : > { %588 = vmatpush1.bf16.msra.mxu1 %v273_v27  ;;  %998 = vmatmul.mubr.msk.bf16.vlgmr.msra.gmra.mrb[0].mxu0 %vm549_vm1, %v1140_v52  ;;  %v241_v13 = vld [vmem:[%s1339_s5 + $0x140] sm:$0xff]  ;;  %v243_v14 = vld [vmem:[%s1339_s5 + $0x150] sm:$0xff]  ;;  %v246_v15 = vld [vmem:[%s1339_s5 + $0x168] sm:$0xff] }
  0x2c   : > { %589 = vmatprep.subr.bf16.mxu1 %v276_v28  ;;  %736 = vmatprep.mubr.bf16.mxu0 %v1249_v0  ;;  %v248_v16 = vld [vmem:[%s1339_s5 + $0x178] sm:$0xff]  ;;  %v287_v17 = vpack.c.bf16 %v243_v14, %v241_v13  ;;  %v338_v19 = vld [vmem:[%s1706_s1 + $0x28] sm:$0xff]  ;;  %v337_v20 = vld [vmem:[%s1706_s1 + $0x20] sm:$0xff] }
  0x2d   : > { %361 = vperm.xlu1 %1136, %v335_v8   ;;  %v1147_v18 = vld [vmem:[%s1705_s0 + $0x38] ss:$12 sps:$4 sm:$0xff]   ;;  %v290_v21 = vpack.c.bf16 %v248_v16, %v246_v15  ;;  %v247_v23 = vld [vmem:[%s1339_s5 + $0x170] sm:$0xff]  ;;  %v250_v24 = vld [vmem:[%s1339_s5 + $0x188] sm:$0xff] }
  0x2e   : > { %356 = vperm.xlu0 %1135, %v334_v10   ;;  %v245_v22 = vld [vmem:[%s1339_s5 + $0x160] sm:$0xff]  ;;  %v252_v25 = vld [vmem:[%s1339_s5 + $0x198] sm:$0xff]  ;;  %v339_v28 = vld [vmem:[%s1706_s1 + $0x30] sm:$0xff] }
  0x2f   : > { %590 = vmatpush1.bf16.msra.mxu1 %v275_v33  ;;  %v289_v26 = vpack.c.bf16 %v247_v23, %v245_v22  ;;  %v340_v27 = vld [vmem:[%s1706_s1 + $0x38] sm:$0xff]  ;;  %v292_v29 = vpack.c.bf16 %v252_v25, %v250_v24  ;;  %v249_v30 = vld [vmem:[%s1339_s5 + $0x180] sm:$0xff]  ;;  %v251_v31 = vld [vmem:[%s1339_s5 + $0x190] sm:$0xff] }
  0x30   : > { %591 = vmatprep.subr.bf16.mxu1 %v278_v34  ;;  %v254_v32 = vld [vmem:[%s1339_s5 + $0x1a8] sm:$0xff]  ;;  %v256_v33 = vld [vmem:[%s1339_s5 + $0x1b8] sm:$0xff]  ;;  %v291_v34 = vpack.c.bf16 %v251_v31, %v249_v30  ;;  %v341_v37 = vld [vmem:[%s1706_s1 + $0x40] sm:$0xff] }
  0x31   : > { %366 = vperm.xlu1 %1136, %v336_v11   ;;  %v1151_v35 = vld [vmem:[%s1705_s0 + $0x50] ss:$12 sps:$4 sm:$0xff]   ;;  %v342_v36 = vld [vmem:[%s1706_s1 + $0x48] sm:$0xff]  ;;  %v294_v38 = vpack.c.bf16 %v256_v33, %v254_v32  ;;  %v257_v47 = vld [vmem:[%s1339_s5 + $0x1c0] sm:$0xff] }
  0x32   : > { %371 = vperm.xlu0 %1135, %v337_v20   ;;  %v255_v40 = vld [vmem:[%s1339_s5 + $0x1b0] sm:$0xff]  ;;  %v258_v41 = vld [vmem:[%s1339_s5 + $0x1c8] sm:$0xff]  ;;  %v344_v44 = vld [vmem:[%s1706_s1 + $0x58] sm:$0xff] }
  0x33   : > { %592 = vmatpush1.bf16.msra.mxu1 %v277_v39  ;;  %999 = vmatmul.mubr.msk.bf16.gmra.mrb[4].mxu0 %vm549_vm1, %v1143_v63  ;;  %v253_v39 = vld [vmem:[%s1339_s5 + $0x1a0] sm:$0xff]  ;;  %v343_v45 = vld [vmem:[%s1706_s1 + $0x50] sm:$0xff]  ;;  %v264_v50 = vld [vmem:[%s1339_s5 + $0x1f8] sm:$0xff] }
  0x34   : > { %593 = vmatprep.subr.bf16.mxu1 %v280_v42  ;;  %746 = vmatprep.mubr.bf16.mxu0 %v1249_v0  ;;  %v260_v42 = vld [vmem:[%s1339_s5 + $0x1d8] sm:$0xff]  ;;  %v293_v43 = vpack.c.bf16 %v255_v40, %v253_v39  ;;  %v259_v48 = vld [vmem:[%s1339_s5 + $0x1d0] sm:$0xff]  ;;  %v345_v54 = vld [vmem:[%s1706_s1 + $0x60] sm:$0xff] }
  0x35   : > { %376 = vperm.xlu1 %1136, %v338_v19   ;;  %v296_v46 = vpack.c.bf16 %v260_v42, %v258_v41  ;;  %v295_v51 = vpack.c.bf16 %v259_v48, %v257_v47  ;;  %v1155_v52 = vld [vmem:[%s1705_s0 + $0x68] ss:$12 sps:$4 sm:$0xff]   ;;  %v261_v56 = vld [vmem:[%s1339_s5 + $0x1e0] sm:$0xff]  ;;  %v348_v59 = vld [vmem:[%s1706_s1 + $0x78] sm:$0xff] }
  0x36   : > { %381 = vperm.xlu0 %1135, %v339_v28   ;;  %v263_v57 = vld [vmem:[%s1339_s5 + $0x1f0] sm:$0xff]  ;;  %v1137_v61 = vld [vmem:[%s1705_s0] ss:$12 sps:$4 sm:$0xff]   ;;  %v1141_v62 = vld [vmem:[%s1705_s0 + $0x1c] ss:$12 sps:$4 sm:$0xff]  }
  0x37   : > { %594 = vmatpush1.bf16.msra.mxu1 %v279_v49  ;;  %v262_v49 = vld [vmem:[%s1339_s5 + $0x1e8] sm:$0xff]  ;;  %v1145_v2 = vld [vmem:[%s1705_s0 + $0x34] ss:$12 sps:$4 sm:$0xff]   ;;  %v1148_v4 = vld [vmem:[%s1705_s0 + $0x30] ss:$12 sps:$4 sm:$0xff]   ;;  %s186_s5 = sand.u32 1, %s1231_s13  }
  0x38   : > { %595 = vmatprep.subr.bf16.mxu1 %v282_v53  ;;  %v346_v53 = vld [vmem:[%s1706_s1 + $0x68] sm:$0xff]  ;;  %v298_v55 = vpack.c.bf16 %v264_v50, %v262_v49  ;;  %v1167_v6 = vld [vmem:[%s1705_s0 + $0xb0] ss:$12 sps:$4 sm:$0xff]   ;;  %v1160_v10 = vld [vmem:[%s1705_s0 + $0x78] ss:$12 sps:$4 sm:$0xff]   ;;  %s971_s28 = sshll.u32 %s186_s5, 8 }
  0x39   : > { %386 = vperm.xlu1 %1136, %v340_v27   ;;  %v1159_v63 = vld [vmem:[%s1705_s0 + $0x80] ss:$12 sps:$4 sm:$0xff]   ;;  %v1153_v7 = vld [vmem:[%s1705_s0 + $0x64] ss:$12 sps:$4 sm:$0xff]   ;;  %v1168_v14 = vld [vmem:[%s1705_s0 + $0xa8] ss:$12 sps:$4 sm:$0xff]  }
  0x3a   : > { %391 = vperm.xlu0 %1135, %v341_v37   ;;  %v1149_v5 = vld [vmem:[%s1705_s0 + $0x4c] ss:$12 sps:$4 sm:$0xff]   ;;  %v1161_v11 = vld [vmem:[%s1705_s0 + $0x94] ss:$12 sps:$4 sm:$0xff]   ;;  %s1574_s29 = scalar_lea.vmem [#allocation2], %s971_s28  ;;  %s1659_s15 = scalar_lea.sflag [#allocation3], %s186_s5 }
  0x3b   : > { %596 = vmatpush1.bf16.msra.mxu1 %v281_v58  ;;  %1000 = vmatmul.mubr.msk.bf16.gmra.mrb[8].mxu0 %vm549_vm1, %v1147_v18  ;;  %v297_v58 = vpack.c.bf16 %v263_v57, %v261_v56  ;;  %v1156_v8 = vld [vmem:[%s1705_s0 + $0x60] ss:$12 sps:$4 sm:$0xff]   ;;  %s887_s4 = sshll.u32 %s1574_s29, 4  ;;  %s1652_s4 = int_to_ptr.vmem [resolvable:$true] %s887_s4 }
  0x3c   : > { %597 = vmatprep.subr.bf16.mxu1 %v284_v60  ;;  %756 = vmatprep.mubr.bf16.mxu0 %v1249_v0  ;;  %v347_v60 = vld [vmem:[%s1706_s1 + $0x70] sm:$0xff]  ;;  %v1165_v13 = vld [vmem:[%s1705_s0 + $0xac] ss:$12 sps:$4 sm:$0xff]   ;;  %s1169_s9 = scalar_lea.vmem %s1652_s4, 4096  ;;  %p1176_p1 = scmp.lt.s32.totalorder %s1652_s4, %s1174_s11 }
  0x3d   : > { %396 = vperm.xlu1 %1136, %v342_v36   ;;  %p1170_p12 = scmp.ne.s32.totalorder %s1652_s4, %s1169_s9  ;;  %p1177_p2 = scmp.lt.s32.totalorder %s1175_s18, %s1169_s9 }
  0x3e   : > { %401 = vperm.xlu0 %1135, %v343_v45  }
  0x3f   : > { %598 = vmatpush1.bf16.msra.mxu1 %v283_v1  ;;  %v1144_v1 = vld [vmem:[%s1705_s0 + $0x18] ss:$12 sps:$4 sm:$0xff]   ;;  %p1171_p13 = pnand %p1170_p12, %p1313_p4  ;;  %p1178_p3 = por %p1177_p2, %p1176_p1 }
  0x40   : > { %599 = vmatprep.subr.bf16.mxu1 %v286_v3  ;;  %v1163_v3 = vld [vmem:[%s1705_s0 + $0x98] ss:$12 sps:$4 sm:$0xff]  }
  0x41   : > { %406 = vperm.xlu1 %1136, %v344_v44   ;;  %p1172_p0 = pneg %p1171_p13 }
  0x42   : > { %411 = vperm.xlu0 %1135, %v345_v54  }
  0x43   : > { %600 = vmatpush1.bf16.msra.mxu1 %v285_v9  ;;  %1001 = vmatmul.mubr.msk.bf16.gmra.mrb[12].mxu0 %vm549_vm1, %v1151_v35  ;;  %v1157_v9 = vld [vmem:[%s1705_s0 + $0x7c] ss:$12 sps:$4 sm:$0xff]   ;;  %p1179_p5 = pnand %p1178_p3, %p1172_p0 }
  0x44   : > { %601 = vmatprep.subr.bf16.mxu1 %v288_v12  ;;  %766 = vmatprep.mubr.bf16.mxu0 %v1249_v0  ;;  %v1164_v12 = vld [vmem:[%s1705_s0 + $0x90] ss:$12 sps:$4 sm:$0xff]  }
  0x45   : > { %416 = vperm.xlu1 %1136, %v346_v53  }
  0x46   : > { %421 = vperm.xlu0 %1135, %v347_v60  }
  0x47   : > { %602 = vmatpush1.bf16.msra.mxu1 %v287_v17 }
  0x48   : > { %603 = vmatprep.subr.bf16.mxu1 %v290_v21 }
  0x49   : > { %426 = vperm.xlu1 %1136, %v348_v59  }
  0x4b   : > { %604 = vmatpush1.bf16.msra.mxu1 %v289_v26  ;;  %1002 = vmatmul.mubr.msk.bf16.gmra.mrb[16].mxu0 %vm549_vm1, %v1155_v52 }
  0x4c   : > { %605 = vmatprep.subr.bf16.mxu1 %v292_v29  ;;  %776 = vmatprep.mubr.bf16.mxu0 %v1249_v0 }
  0x4f   : > { %606 = vmatpush1.bf16.msra.mxu1 %v291_v34 }
  0x50   : > { %607 = vmatprep.subr.bf16.mxu1 %v294_v38 }
  0x53   : > { %608 = vmatpush1.bf16.msra.mxu1 %v293_v43  ;;  %1003 = vmatmul.mubr.msk.bf16.gmra.mrb[20].mxu0 %vm549_vm1, %v1159_v63 }
  0x54   : > { %609 = vmatprep.subr.bf16.mxu1 %v296_v46  ;;  %786 = vmatprep.mubr.bf16.mxu0 %v1249_v0 }
  0x57   : > { %610 = vmatpush1.bf16.msra.mxu1 %v295_v51 }
  0x58   : > { %611 = vmatprep.subr.bf16.mxu1 %v298_v55 }
  0x5b   : > { %612 = vmatpush1.bf16.msra.mxu1 %v297_v58  ;;  %1004 = vmatmul.mubr.msk.bf16.gmra.mrb[24].mxu0 %vm549_vm1, %v1163_v3 }
  0x5c   : > { %796 = vmatprep.mubr.bf16.mxu0 %v1249_v0  ;;  %v1152_v0 = vld [vmem:[%s1705_s0 + $0x48] ss:$12 sps:$4 sm:$0xff]  }
  0x5e   : > { %614 = vmatmul.mubr.bf16.vlgmr.msra.gmra.mrb[0].mxu1 %v1137_v61 }
  0x5f   : > { %623 = vmatprep.mubr.bf16.mxu1 %v1141_v62 }
  0x63   : > { %1005 = vmatmul.mubr.msk.bf16.gmra.mrb[28].mxu0 %vm549_vm1, %v1167_v6 }
  0x66   : > { %624 = vmatmul.mubr.bf16.gmra.mrb[4].mxu1 %v1144_v1 }
  0x67   : > { %633 = vmatprep.mubr.bf16.mxu1 %v1145_v2 }
  0x6e   : > { %634 = vmatmul.mubr.bf16.gmra.mrb[8].mxu1 %v1148_v4 }
  0x6f   : > { %643 = vmatprep.mubr.bf16.mxu1 %v1149_v5 }
  0x76   : > { %644 = vmatmul.mubr.bf16.gmra.mrb[12].mxu1 %v1152_v0 }
  0x77   : > { %653 = vmatprep.mubr.bf16.mxu1 %v1153_v7 }
  0x7e   : > { %654 = vmatmul.mubr.bf16.gmra.mrb[16].mxu1 %v1156_v8 }
  0x7f   : > { %663 = vmatprep.mubr.bf16.mxu1 %v1157_v9 }
  0x86   : > { %664 = vmatmul.mubr.bf16.gmra.mrb[20].mxu1 %v1160_v10 }
  0x87   : > { %673 = vmatprep.mubr.bf16.mxu1 %v1161_v11 }
  0x8e   : > { %674 = vmatmul.mubr.bf16.gmra.mrb[24].mxu1 %v1164_v12 }
  0x8f   : > { %683 = vmatprep.mubr.bf16.mxu1 %v1165_v13 }
  0x96   : > { %684 = vmatmul.mubr.bf16.gmra.mrb[28].mxu1 %v1168_v14 }
  0xa9   : > { %v352_v32 = vpop.permute.xlu0 %351 }
  0xac   : > { %v362_v36 = vpop.permute.xlu1 %361 }
  0xad   : > { %v357_v38 = vpop.permute.xlu0 %356 }
  0xb0   : > { %v367_v58 = vpop.permute.xlu1 %366 }
  0xb4   : > { %v377_v14 = vpop.permute.xlu1 %376 }
  0xfe   : > { %v728_v15 = vpop.f32.mrb[0].mxu0 }
  0xff   : > { %v730_v16 = vpop.f32.mrb[1].mxu0 }
 0x100   : > { %v732_v17 = vpop.f32.mrb[2].mxu0 }
 0x101   : > { %v734_v18 = vpop.f32.mrb[3].mxu0 }
 0x106   : > { %v738_v19 = vpop.f32.mrb[4].mxu0 }
 0x107   : > { %v740_v20 = vpop.f32.mrb[5].mxu0 }
 0x108   : > { %v742_v21 = vpop.f32.mrb[6].mxu0 }
 0x109   : > { %v744_v22 = vpop.f32.mrb[7].mxu0 }
 0x10e   : > { %v1539_v23 = vpop.f32.mrb[8].mxu0 }
 0x10f   : > { %v1541_v24 = vpop.f32.mrb[9].mxu0 }
 0x110   : > { %v1543_v25 = vpop.f32.mrb[10].mxu0 }
 0x111   : > { %v1545_v26 = vpop.f32.mrb[11].mxu0 }
 0x116   : > { %v1547_v27 = vpop.f32.mrb[12].mxu0 }
 0x117   : > { %v1549_v28 = vpop.f32.mrb[13].mxu0 }
 0x118   : > { %v1551_v29 = vpop.f32.mrb[14].mxu0 }
 0x119   : > { %v1553_v30 = vpop.f32.mrb[15].mxu0 }
 0x11e   : > { %v1555_v31 = vpop.f32.mrb[16].mxu0 }
 0x11f   : > { %v1557_v33 = vpop.f32.mrb[17].mxu0 }
 0x120   : > { %v1559_v34 = vpop.f32.mrb[18].mxu0 }
 0x121   : > { %v1561_v35 = vpop.f32.mrb[19].mxu0 }
 0x126   : > { %v1566_v41 = vpop.f32.mrb[20].mxu0 }
 0x127   : > { %v1568_v44 = vpop.f32.mrb[21].mxu0 }
 0x128   : > { %v1570_v48 = vpop.f32.mrb[22].mxu0 }
 0x129   : > { %v1572_v51 = vpop.f32.mrb[23].mxu0 }
 0x12e   : > { %v1579_v62 = vpop.f32.mrb[24].mxu0 }
 0x12f   : > { %v1582_v2 = vpop.f32.mrb[25].mxu0 }
 0x130   : > { %v1584_v6 = vpop.f32.mrb[26].mxu0 }
 0x131   : > { %v615_v37 = vpop.f32.mrb[0].mxu1  ;;  %v1586_v8 = vpop.f32.mrb[27].mxu0 }
 0x132   : > { %v616_v39 = vadd.f32 %v615_v37, %v352_v32  ;;  %v617_v40 = vpop.f32.mrb[1].mxu1 }
 0x133   : > { %v618_v42 = vadd.f32 %v617_v40, %v352_v32  ;;  %v619_v43 = vpop.f32.mrb[2].mxu1 }
 0x134   : > { %v729_v45 = vadd.f32 %v728_v15, %v616_v39  ;;  %v620_v46 = vadd.f32 %v619_v43, %v357_v38  ;;  %v621_v47 = vpop.f32.mrb[3].mxu1  ;;  %v372_v15 = vpop.permute.xlu0 %371 }
 0x135   : > { %v731_v49 = vadd.f32 %v730_v16, %v618_v42  ;;  %v622_v50 = vadd.f32 %v621_v47, %v357_v38 }
 0x136   : > { %v807_v52 = vmax.f32 %v729_v45, 0.0  ;;  %v733_v53 = vadd.f32 %v732_v17, %v620_v46  ;;  %v1591_v32 = vpop.f32.mrb[28].mxu0 }
 0x137   : > { %v808_v54 = vmax.f32 %v731_v49, 0.0  ;;  %v735_v55 = vadd.f32 %v734_v18, %v622_v50 }
 0x138   : > { %839 = vst [vmem:[%s1574_s29] sm:$0xff] %v807_v52  ;;  %v809_v56 = vmax.f32 %v733_v53, 0.0 }
 0x139   : > { %840 = vst [vmem:[%s1574_s29 + $0x8] sm:$0xff] %v808_v54  ;;  %v810_v57 = vmax.f32 %v735_v55, 0.0  ;;  %v625_v59 = vpop.f32.mrb[4].mxu1  ;;  %v387_v55 = vpop.permute.xlu1 %386 }
 0x13a   : > { %841 = vst [vmem:[%s1574_s29 + $0x10] sm:$0xff] %v809_v56  ;;  %v626_v60 = vadd.f32 %v625_v59, %v362_v36  ;;  %v627_v61 = vpop.f32.mrb[5].mxu1 }
 0x13b   : > { %842 = vst [vmem:[%s1574_s29 + $0x18] sm:$0xff] %v810_v57  ;;  %v628_v63 = vadd.f32 %v627_v61, %v362_v36  ;;  %v629_v1 = vpop.f32.mrb[6].mxu1 }
 0x13c   : > { %v739_v3 = vadd.f32 %v738_v19, %v626_v60  ;;  %v630_v4 = vadd.f32 %v629_v1, %v367_v58  ;;  %v631_v5 = vpop.f32.mrb[7].mxu1 }
 0x13d   : > { %v741_v0 = vadd.f32 %v740_v20, %v628_v63  ;;  %v632_v7 = vadd.f32 %v631_v5, %v367_v58 }
 0x13e   : > { %v811_v9 = vmax.f32 %v739_v3, 0.0  ;;  %v743_v10 = vadd.f32 %v742_v21, %v630_v4  ;;  %v1594_v21 = vpop.f32.mrb[29].mxu0 }
 0x13f   : > { %v812_v11 = vmax.f32 %v741_v0, 0.0  ;;  %v745_v12 = vadd.f32 %v744_v22, %v632_v7  ;;  %v1597_v39 = vpop.f32.mrb[30].mxu0 }
 0x140   : > { %843 = vst [vmem:[%s1574_s29 + $0x20] sm:$0xff] %v811_v9  ;;  %v813_v13 = vmax.f32 %v743_v10, 0.0  ;;  %v1600_v43 = vpop.f32.mrb[31].mxu0  ;;  %v397_v10 = vpop.permute.xlu1 %396 }
 0x141   : > { %844 = vst [vmem:[%s1574_s29 + $0x28] sm:$0xff] %v812_v11  ;;  %v814_v16 = vmax.f32 %v745_v12, 0.0  ;;  %v635_v17 = vpop.f32.mrb[8].mxu1 }
 0x142   : > { %845 = vst [vmem:[%s1574_s29 + $0x30] sm:$0xff] %v813_v13  ;;  %v636_v18 = vadd.f32 %v635_v17, %v372_v15  ;;  %v637_v19 = vpop.f32.mrb[9].mxu1 }
 0x143   : > { %846 = vst [vmem:[%s1574_s29 + $0x38] sm:$0xff] %v814_v16  ;;  %v638_v20 = vadd.f32 %v637_v19, %v372_v15  ;;  %v639_v36 = vpop.f32.mrb[10].mxu1 }
 0x144   : > { %v749_v22 = vadd.f32 %v1539_v23, %v636_v18  ;;  %v640_v37 = vadd.f32 %v639_v36, %v377_v14  ;;  %v641_v38 = vpop.f32.mrb[11].mxu1  ;;  %v382_v23 = vpop.permute.xlu0 %381 }
 0x145   : > { %v751_v40 = vadd.f32 %v1541_v24, %v638_v20  ;;  %v642_v42 = vadd.f32 %v641_v38, %v377_v14  ;;  %v407_v38 = vpop.permute.xlu1 %406 }
 0x146   : > { %v815_v45 = vmax.f32 %v749_v22, 0.0  ;;  %v753_v46 = vadd.f32 %v1543_v25, %v640_v37 }
 0x147   : > { %v816_v47 = vmax.f32 %v751_v40, 0.0  ;;  %v755_v49 = vadd.f32 %v1545_v26, %v642_v42 }
 0x148   : > { %847 = vst [vmem:[%s1574_s29 + $0x40] sm:$0xff] %v815_v45  ;;  %v817_v50 = vmax.f32 %v753_v46, 0.0  ;;  %v392_v5 = vpop.permute.xlu0 %391 }
 0x149   : > { %848 = vst [vmem:[%s1574_s29 + $0x48] sm:$0xff] %v816_v47  ;;  %v818_v52 = vmax.f32 %v755_v49, 0.0  ;;  %v645_v53 = vpop.f32.mrb[12].mxu1 }
 0x14a   : > { %849 = vst [vmem:[%s1574_s29 + $0x50] sm:$0xff] %v817_v50  ;;  %v646_v54 = vadd.f32 %v645_v53, %v382_v23  ;;  %v647_v24 = vpop.f32.mrb[13].mxu1 }
 0x14b   : > { %850 = vst [vmem:[%s1574_s29 + $0x58] sm:$0xff] %v818_v52  ;;  %v648_v56 = vadd.f32 %v647_v24, %v382_v23  ;;  %v649_v57 = vpop.f32.mrb[14].mxu1 }
 0x14c   : > { %v759_v25 = vadd.f32 %v1547_v27, %v646_v54  ;;  %v650_v58 = vadd.f32 %v649_v57, %v387_v55  ;;  %v651_v26 = vpop.f32.mrb[15].mxu1  ;;  %v402_v20 = vpop.permute.xlu0 %401 }
 0x14d   : > { %v761_v59 = vadd.f32 %v1549_v28, %v648_v56  ;;  %v652_v60 = vadd.f32 %v651_v26, %v387_v55  ;;  %v417_v56 = vpop.permute.xlu1 %416 }
 0x14e   : > { %v819_v61 = vmax.f32 %v759_v25, 0.0  ;;  %v763_v63 = vadd.f32 %v1551_v29, %v650_v58 }
 0x14f   : > { %v820_v1 = vmax.f32 %v761_v59, 0.0  ;;  %v765_v3 = vadd.f32 %v1553_v30, %v652_v60 }
 0x150   : > { %851 = vst [vmem:[%s1574_s29 + $0x60] sm:$0xff] %v819_v61  ;;  %v821_v4 = vmax.f32 %v763_v63, 0.0  ;;  %v412_v53 = vpop.permute.xlu0 %411 }
 0x151   : > { %852 = vst [vmem:[%s1574_s29 + $0x68] sm:$0xff] %v820_v1  ;;  %v822_v0 = vmax.f32 %v765_v3, 0.0  ;;  %v655_v7 = vpop.f32.mrb[16].mxu1 }
 0x152   : > { %853 = vst [vmem:[%s1574_s29 + $0x70] sm:$0xff] %v821_v4  ;;  %v656_v27 = vadd.f32 %v655_v7, %v392_v5  ;;  %v657_v9 = vpop.f32.mrb[17].mxu1 }
 0x153   : > { %854 = vst [vmem:[%s1574_s29 + $0x78] sm:$0xff] %v822_v0  ;;  %v658_v28 = vadd.f32 %v657_v9, %v392_v5  ;;  %v659_v11 = vpop.f32.mrb[18].mxu1 }
 0x154   : > { %v769_v29 = vadd.f32 %v1555_v31, %v656_v27  ;;  %v660_v12 = vadd.f32 %v659_v11, %v397_v10  ;;  %v661_v30 = vpop.f32.mrb[19].mxu1  ;;  %v422_v3 = vpop.permute.xlu0 %421 }
 0x155   : > { %v771_v13 = vadd.f32 %v1557_v33, %v658_v28  ;;  %v662_v14 = vadd.f32 %v661_v30, %v397_v10 }
 0x156   : > { %v823_v15 = vmax.f32 %v769_v29, 0.0  ;;  %v773_v16 = vadd.f32 %v1559_v34, %v660_v12 }
 0x157   : > { %v824_v17 = vmax.f32 %v771_v13, 0.0  ;;  %v775_v18 = vadd.f32 %v1561_v35, %v662_v14 }
 0x158   : > { %855 = vst [vmem:[%s1574_s29 + $0x80] sm:$0xff] %v823_v15  ;;  %v825_v19 = vmax.f32 %v773_v16, 0.0 }
 0x159   : > { %856 = vst [vmem:[%s1574_s29 + $0x88] sm:$0xff] %v824_v17  ;;  %v826_v36 = vmax.f32 %v775_v18, 0.0  ;;  %v665_v22 = vpop.f32.mrb[20].mxu1 }
 0x15a   : > { %857 = vst [vmem:[%s1574_s29 + $0x90] sm:$0xff] %v825_v19  ;;  %v666_v31 = vadd.f32 %v665_v22, %v402_v20  ;;  %v667_v37 = vpop.f32.mrb[21].mxu1 }
 0x15b   : > { %858 = vst [vmem:[%s1574_s29 + $0x98] sm:$0xff] %v826_v36  ;;  %v668_v33 = vadd.f32 %v667_v37, %v402_v20  ;;  %v669_v40 = vpop.f32.mrb[22].mxu1 }
 0x15c   : > { %v779_v34 = vadd.f32 %v1566_v41, %v666_v31  ;;  %v670_v42 = vadd.f32 %v669_v40, %v407_v38  ;;  %v671_v35 = vpop.f32.mrb[23].mxu1 }
 0x15d   : > { %v781_v45 = vadd.f32 %v1568_v44, %v668_v33  ;;  %v672_v46 = vadd.f32 %v671_v35, %v407_v38 }
 0x15e   : > { %v827_v47 = vmax.f32 %v779_v34, 0.0  ;;  %v783_v49 = vadd.f32 %v1570_v48, %v670_v42 }
 0x15f   : > { %v828_v50 = vmax.f32 %v781_v45, 0.0  ;;  %v785_v23 = vadd.f32 %v1572_v51, %v672_v46 }
 0x160   : > { %859 = vst [vmem:[%s1574_s29 + $0xa0] sm:$0xff] %v827_v47  ;;  %v829_v52 = vmax.f32 %v783_v49, 0.0 }
 0x161   : > { %860 = vst [vmem:[%s1574_s29 + $0xa8] sm:$0xff] %v828_v50  ;;  %v830_v54 = vmax.f32 %v785_v23, 0.0  ;;  %v675_v24 = vpop.f32.mrb[24].mxu1 }
 0x162   : > { %861 = vst [vmem:[%s1574_s29 + $0xb0] sm:$0xff] %v829_v52  ;;  %v676_v41 = vadd.f32 %v675_v24, %v412_v53  ;;  %v677_v55 = vpop.f32.mrb[25].mxu1 }
 0x163   : > { %862 = vst [vmem:[%s1574_s29 + $0xb8] sm:$0xff] %v830_v54  ;;  %v678_v44 = vadd.f32 %v677_v55, %v412_v53  ;;  %v679_v57 = vpop.f32.mrb[26].mxu1 }
 0x164   : > { %v789_v48 = vadd.f32 %v1579_v62, %v676_v41  ;;  %v680_v25 = vadd.f32 %v679_v57, %v417_v56  ;;  %v681_v51 = vpop.f32.mrb[27].mxu1 }
 0x165   : > { %v791_v58 = vadd.f32 %v1582_v2, %v678_v44  ;;  %v682_v26 = vadd.f32 %v681_v51, %v417_v56  ;;  %v427_v2 = vpop.permute.xlu1 %426 }
 0x166   : > { %v831_v59 = vmax.f32 %v789_v48, 0.0  ;;  %v793_v60 = vadd.f32 %v1584_v6, %v680_v25 }
 0x167   : > { %v832_v61 = vmax.f32 %v791_v58, 0.0  ;;  %v795_v63 = vadd.f32 %v1586_v8, %v682_v26 }
 0x168   : > { %863 = vst [vmem:[%s1574_s29 + $0xc0] sm:$0xff] %v831_v59  ;;  %v833_v1 = vmax.f32 %v793_v60, 0.0 }
 0x169   : > { %864 = vst [vmem:[%s1574_s29 + $0xc8] sm:$0xff] %v832_v61  ;;  %v834_v4 = vmax.f32 %v795_v63, 0.0  ;;  %v685_v62 = vpop.f32.mrb[28].mxu1 }
 0x16a   : > { %865 = vst [vmem:[%s1574_s29 + $0xd0] sm:$0xff] %v833_v1  ;;  %v686_v5 = vadd.f32 %v685_v62, %v422_v3  ;;  %v687_v0 = vpop.f32.mrb[29].mxu1 }
 0x16b   : > { %866 = vst [vmem:[%s1574_s29 + $0xd8] sm:$0xff] %v834_v4  ;;  %v688_v7 = vadd.f32 %v687_v0, %v422_v3  ;;  %v689_v27 = vpop.f32.mrb[30].mxu1 }
 0x16c   : > { %v799_v6 = vadd.f32 %v1591_v32, %v686_v5  ;;  %v690_v8 = vadd.f32 %v689_v27, %v427_v2  ;;  %v691_v9 = vpop.f32.mrb[31].mxu1 }
 0x16d   : > { %v801_v10 = vadd.f32 %v1594_v21, %v688_v7  ;;  %v692_v28 = vadd.f32 %v691_v9, %v427_v2 }
 0x16e   : > { %v835_v11 = vmax.f32 %v799_v6, 0.0  ;;  %v803_v29 = vadd.f32 %v1597_v39, %v690_v8 }
 0x16f   : > { %v836_v12 = vmax.f32 %v801_v10, 0.0  ;;  %v805_v30 = vadd.f32 %v1600_v43, %v692_v28 }
 0x170   : > { %867 = vst [vmem:[%s1574_s29 + $0xe0] sm:$0xff] %v835_v11  ;;  %v837_v13 = vmax.f32 %v803_v29, 0.0 }
 0x171   : > { %868 = vst [vmem:[%s1574_s29 + $0xe8] sm:$0xff] %v836_v12  ;;  %v838_v32 = vmax.f32 %v805_v30, 0.0 }
 0x172   : > { %869 = vst [vmem:[%s1574_s29 + $0xf0] sm:$0xff] %v837_v13 }
 0x173   : > { %870 = vst [vmem:[%s1574_s29 + $0xf8] sm:$0xff] %v838_v32 }
 0x174   : > { %1182 = shalt.err (!%p1179_p5)
}
 0x175   : > { %s1183_s19 = scalar_lea.hbm %s1650_s8, 4096  ;;  %s1187_s26 = scalar_lea.hbm %s1708_s3, 8192 }
 0x176   : > { %p1184_p6 = scmp.ne.s32.totalorder %s1650_s8, %s1183_s19  ;;  %p1188_p10 = scmp.lt.u32.totalorder %s1650_s8, %s1708_s3 }
 0x177   : > { %p1189_p11 = scmp.lt.u32.totalorder %s1187_s26, %s1183_s19  ;;  %p1191_p13 = scmp.lt.u32.totalorder %s1183_s19, %s1650_s8 }
 0x178   : > { %p1185_p7 = pnand %p1184_p6, %p1313_p4 }
 0x179   : > { %p1190_p12 = por %p1189_p11, %p1188_p10 }
 0x17a   : > { %p1186_p9 = pneg %p1185_p7 }
 0x17b   : > { %p1192_p0 = por %p1191_p13, %p1190_p12 }
 0x17d   : > { %p1193_p1 = pnand %p1192_p0, %p1186_p9 }
 0x17f   : > { %1196 = shalt.err (!%p1193_p1)
}
 0x180   : > { %s1251_s28 = smov 256   ;;  %s1252_s29 = smov 16  }
 0x181   : > { %1077 = dma.vmem_to_hbm [thread:$0]  (%p1313_p4), %s1652_s4, 4096, %s1650_s8, %s1659_s15, %s1251_s28, %s1251_s28, %s1252_s29  }
 0x182 PF: > { %p1083_p2 = scmp.ge.s32.totalorder %s1247_s17, 2  ;;  %s902_s30 = sand.u32 1, %s1227_s12  }
 0x183   : > { %s903_s6 = scalar_lea.sflag [#allocation3], %s902_s30 }
 0x184   : > { %p1080_p3 = pnand %p1083_p2, %p1320_p8 }
 0x186   : > { %1222 = dma.done.wait (!%p1080_p3), %s903_s6, 4096  }
 0x187   : > { %1224 = vsyncadd (!%p1080_p3), %s903_s6, 4294963200  ;;  %s16_s17 = sadd.s32 1, %s1247_s17   ;;  %s1711_s12 = smov %s1231_s13 }
 0x188   : > { %p13_p5 = scmp.ge.s32.totalorder %s16_s17, 4   ;;  %s1712_s13 = smov %s1235_s14 }
 0x189   : > { %s1713_s14 = smov %s1326_s25  ;;  %s1714_s15 = smov %s1243_s16 }
 0x18a   : > { %s1715_s16 = smov %s1717_s20  ;;  %15 = sbr.rel (!%p13_p5) target bundleno = 4 (0x4), region = 67 }
 0x191   :  { %908 = vsyncpa [#allocation3], 1 }
 0x192   :  { %910 = vsyncpa [#allocation3 + $0x1], 1 }

</bundles_post_ra>
